<compile_context>
chip_gen: v7x
topology: tpu7x:2x2x1
jax: 0.10.0
libtpu: 0.0.40
codegen_flags: <defaults>
</compile_context>

<pallas_src>
import jax
import jax.numpy as jnp
from jax.experimental import pallas as pl
from jax.experimental.pallas import tpu as pltpu


def attention_kernel(x_ref, mask_ref, v_ref, w_ref, b_ref, out_ref, attn_ref):
    """x (BB,S,H), mask (BB,S), v = W@q (1,H), W (H,H), bias (1,H)."""
    x = x_ref[...].astype(jnp.float32)                       # (BB, S, H), f32 compute
    mask = mask_ref[...]                                     # (BB, S)
    valid = mask > 0

    # --- attention logits: x . (W @ q), lane reduce over H --------------------
    # (the constant bias.q term is dropped: softmax is shift-invariant per row,
    #  so attn matches the reference exactly.)
    scores = jnp.sum(x * v_ref[...], axis=-1)                # (BB, S), lane-dense
    scores = jnp.where(valid, scores, jnp.float32(-1e32))

    # --- masked softmax over the sequence axis --------------------------------
    m = jnp.max(scores, axis=-1, keepdims=True)
    e = jnp.exp(scores - m)
    denom = jnp.sum(e, axis=-1, keepdims=True)
    inv = pl.reciprocal(denom, approx=True)                  # EUP slot
    inv = inv * (2.0 - denom * inv)                          # Newton step -> f32 accuracy
    attn = e * inv                                           # (BB, S)
    attn_ref[...] = attn                                     # lane-dense store

    # --- re-masked pooling + fused output projection ---------------------------
    # reference: out = sum_s masked_attn_s * (x_s @ W + bias)
    #          = (sum_s masked_attn_s * x_s) @ W + (sum_s masked_attn_s) * bias
    masked_attn = jnp.where(valid, attn, 0.0)                # matches reference re-mask
    pooled = jnp.sum(masked_attn[:, :, None] * x, axis=1)    # (BB, H)
    ssum = jnp.sum(masked_attn, axis=-1, keepdims=True)      # (BB, 1): 1.0, or 0.0 if row fully masked
    out = jnp.dot(pooled, w_ref[...], preferred_element_type=jnp.float32) + ssum * b_ref[...]
    out_ref[...] = out.astype(out_ref.dtype)


def _vmem_budget_bytes():
    """Scoped-VMEM budget derived from the actual chip (falls back to v7x floor)."""
    try:
        cap = int(pltpu.get_tpu_info().vmem_capacity_bytes)
    except Exception:
        cap = 64 * 1024 * 1024                                # conservative: v7x physical
    return min(cap * 3 // 4, 100 * 1024 * 1024)               # 48 MiB on v7x, 96 MiB on v5e/v6e


def _footprint_bytes(bb, S, H, x_itemsize):
    """Honest per-step VMEM estimate: double-buffered blocks + f32 intermediates."""
    x_blk = bb * S * H * x_itemsize
    x_f32 = bb * S * H * 4                                    # upcast + elementwise product temps
    small = 2 * (bb * S * 4) * 2 + 2 * (bb * H * 4)           # mask + attn + out blocks (x2 buffers)
    params = 2 * (H * H * 4) + 4 * (H * 4)                    # weight (double-buffered) + v/bias
    return 2 * x_blk + 2 * x_f32 + small + params


def _choose_block_batch(B, S, H, x_itemsize, vmem_limit):
    """Largest batch-block that fits VMEM; BB is a multiple of 8 or the full batch.

    Prefers >= 2 grid steps (ideally an even count) so dimension_semantics
    ("parallel",) can shard across v7x's two TensorCores, as long as that does
    not shrink the block by more than 2x.
    """
    budget = max(vmem_limit - (4 << 20), 1 << 20)
    valid = sorted({bb for bb in range(8, B + 1, 8) if B % bb == 0} | {B})
    fitting = [bb for bb in valid if _footprint_bytes(bb, S, H, x_itemsize) <= budget]
    if not fitting:
        fitting = valid[:1]                                   # smallest legal block
    best = fitting[-1]
    multi = [bb for bb in fitting if B // bb >= 2]
    even = [bb for bb in multi if (B // bb) % 2 == 0]
    for cands in (even, multi):
        if cands and 2 * cands[-1] >= best:
            return cands[-1]
    return best


def attention_forward(batch_hidden, batch_masks, weight, bias, query,
                      *, block_batch=None, input_dtype=jnp.bfloat16):
    """Fused attention forward.  input_dtype=jnp.bfloat16 halves the HBM stream
    for the activations (compute stays f32); pass jnp.float32 for exact numerics."""
    B, S, H = batch_hidden.shape
    if input_dtype is None:
        input_dtype = batch_hidden.dtype

    x = batch_hidden.astype(input_dtype)                      # dominant HBM stream
    masks = batch_masks.astype(jnp.float32)                   # (B, S), lane-dense
    w = weight.astype(jnp.float32)
    v = (w @ query.astype(jnp.float32)).reshape(1, H)         # folded query projection W @ q
    bias2 = bias.reshape(1, H).astype(jnp.float32)

    vmem_limit = _vmem_budget_bytes()
    x_itemsize = jnp.dtype(input_dtype).itemsize
    BB = block_batch if block_batch is not None else _choose_block_batch(
        B, S, H, x_itemsize, vmem_limit)
    assert B % BB == 0 and (BB == B or BB % 8 == 0), (B, BB)

    # TODO(synk): pad S/H to multiples of 128 for fully unmasked vector stores on
    # very large shapes; not needed for correctness (full-dim blocks are legal).
    batch_outputs, attn = pl.pallas_call(
        attention_kernel,
        out_shape=(
            jax.ShapeDtypeStruct((B, H), jnp.float32),
            jax.ShapeDtypeStruct((B, S), jnp.float32),
        ),
        grid_spec=pltpu.PrefetchScalarGridSpec(
            num_scalar_prefetch=0,
            grid=(B // BB,),
            in_specs=[
                pl.BlockSpec((BB, S, H), lambda b: (b, 0, 0)),   # activations
                pl.BlockSpec((BB, S), lambda b: (b, 0)),         # masks (lane-dense)
                pl.BlockSpec((1, H), lambda b: (0, 0)),          # v = W @ q (resident)
                pl.BlockSpec((H, H), lambda b: (0, 0)),          # weight (resident)
                pl.BlockSpec((1, H), lambda b: (0, 0)),          # bias
            ],
            out_specs=[
                pl.BlockSpec((BB, H), lambda b: (b, 0)),         # batch_outputs
                pl.BlockSpec((BB, S), lambda b: (b, 0)),         # attn (lane-dense)
            ],
        ),
        compiler_params=pltpu.CompilerParams(
            dimension_semantics=("parallel",),
            vmem_limit_bytes=int(vmem_limit),
        ),
    )(x, masks, v, w, bias2)

    return batch_outputs, attn


def reference_forward(batch_hidden, batch_masks, weight, bias, query):
    """Pure-JAX transcription of the PyTorch module's forward."""
    key = jnp.einsum("bsh,hk->bsk", batch_hidden, weight) + bias
    outputs = jnp.einsum("bsk,k->bs", key, query)
    masked_outputs = jnp.where(batch_masks > 0, outputs, jnp.float32(-1e32))
    attn = jax.nn.softmax(masked_outputs, axis=1)
    masked_attn = jnp.where(batch_masks > 0, attn, 0.0)
    batch_outputs = jnp.einsum("bs,bsh->bh", masked_attn, key)
    return batch_outputs, attn


if __name__ == "__main__":
    B, S, H = 4, 8, 32
    root = jax.random.PRNGKey(0)
    k_x, k_w, k_b, k_q = jax.random.split(root, 4)

    batch_hidden = jax.random.normal(k_x, (B, S, H), dtype=jnp.float32)
    weight = 0.05 * jax.random.normal(k_w, (H, H), dtype=jnp.float32)
    # module init is zeros; use a small non-zero bias to exercise the folded-bias path
    bias = 0.05 * jax.random.normal(k_b, (H,), dtype=jnp.float32)
    query = 0.05 * jax.random.normal(k_q, (H,), dtype=jnp.float32)

    # masks: full row, padded tail, FULLY masked row (degenerate case), full row
    batch_masks = jnp.array(
        [[1, 1, 1, 1, 1, 1, 1, 1],
         [1, 1, 1, 1, 1, 0, 0, 0],
         [0, 0, 0, 0, 0, 0, 0, 0],
         [1, 1, 1, 1, 1, 1, 1, 1]], dtype=jnp.float32)

    # --- exact f32 path ------------------------------------------------------
    out, attn = attention_forward(batch_hidden, batch_masks, weight, bias, query,
                                  input_dtype=jnp.float32)
    out, attn = jax.block_until_ready((out, attn))
    ref_out, ref_attn = reference_forward(batch_hidden, batch_masks, weight, bias, query)
    assert jnp.allclose(out, ref_out, atol=1e-5, rtol=1e-5), \
        float(jnp.max(jnp.abs(out - ref_out)))
    assert jnp.allclose(attn, ref_attn, atol=1e-5, rtol=1e-5), \
        float(jnp.max(jnp.abs(attn - ref_attn)))

    # --- default bf16-activation fast path ------------------------------------
    # compare against the reference evaluated on the same bf16-rounded activations
    out_b, attn_b = attention_forward(batch_hidden, batch_masks, weight, bias, query)
    out_b, attn_b = jax.block_until_ready((out_b, attn_b))
    x_q = batch_hidden.astype(jnp.bfloat16).astype(jnp.float32)
    ref_out_b, ref_attn_b = reference_forward(x_q, batch_masks, weight, bias, query)
    assert jnp.allclose(out_b, ref_out_b, atol=1e-4, rtol=1e-4), \
        float(jnp.max(jnp.abs(out_b - ref_out_b)))
    assert jnp.allclose(attn_b, ref_attn_b, atol=1e-4, rtol=1e-4), \
        float(jnp.max(jnp.abs(attn_b - ref_attn_b)))

    print("KERNEL_OK")
</pallas_src>

<mosaic_0001>
module attributes {stable_mosaic.version = 11 : i64} {
  func.func @attention_kernel(%arg0: i32, %arg1: memref<4x8x32xf32, #tpu.memory_space<vmem>>, %arg2: memref<4x8xf32, #tpu.memory_space<vmem>>, %arg3: memref<1x32xf32, #tpu.memory_space<vmem>>, %arg4: memref<32x32xf32, #tpu.memory_space<vmem>>, %arg5: memref<1x32xf32, #tpu.memory_space<vmem>>, %arg6: memref<4x32xf32, #tpu.memory_space<vmem>>, %arg7: memref<4x8xf32, #tpu.memory_space<vmem>>) attributes {dimension_semantics = [#tpu.dimension_semantics<parallel>], iteration_bounds = array<i64: 1>, scalar_prefetch = 0 : i64, scratch_operands = 0 : i64, tpu.core_type = #tpu.core_type<tc>, window_params = [{transform_indices = @transform_0, window_bounds = array<i64: 4, 8, 32>}, {transform_indices = @transform_1, window_bounds = array<i64: 4, 8>}, {pipeline_mode = #tpu.pipeline_mode<synchronous>, transform_indices = @transform_2, window_bounds = array<i64: 1, 32>}, {pipeline_mode = #tpu.pipeline_mode<synchronous>, transform_indices = @transform_3, window_bounds = array<i64: 32, 32>}, {pipeline_mode = #tpu.pipeline_mode<synchronous>, transform_indices = @transform_4, window_bounds = array<i64: 1, 32>}, {transform_indices = @transform_5, window_bounds = array<i64: 4, 32>}, {transform_indices = @transform_6, window_bounds = array<i64: 4, 8>}]} {
    %c0 = arith.constant 0 : index
    %c0_0 = arith.constant 0 : index
    %c0_1 = arith.constant 0 : index
    %0 = vector.load %arg1[%c0, %c0_0, %c0_1] : memref<4x8x32xf32, #tpu.memory_space<vmem>>, vector<4x8x32xf32>
    %c0_2 = arith.constant 0 : index
    %c0_3 = arith.constant 0 : index
    %1 = vector.load %arg2[%c0_2, %c0_3] : memref<4x8xf32, #tpu.memory_space<vmem>>, vector<4x8xf32>
    %cst = arith.constant 0.000000e+00 : f32
    %2 = vector.broadcast %cst : f32 to vector<4x8xf32>
    %3 = arith.cmpf ogt, %1, %2 : vector<4x8xf32>
    %c0_4 = arith.constant 0 : index
    %c0_5 = arith.constant 0 : index
    %4 = vector.load %arg3[%c0_4, %c0_5] : memref<1x32xf32, #tpu.memory_space<vmem>>, vector<1x32xf32>
    %5 = vector.shape_cast %4 : vector<1x32xf32> to vector<1x1x32xf32>
    %6 = vector.broadcast %5 : vector<1x1x32xf32> to vector<4x8x32xf32>
    %7 = arith.mulf %0, %6 : vector<4x8x32xf32>
    %cst_6 = arith.constant dense<0.000000e+00> : vector<4x8xf32>
    %8 = vector.multi_reduction <add>, %7, %cst_6 [2] : vector<4x8x32xf32> to vector<4x8xf32>
    %cst_7 = arith.constant -1.000000e+32 : f32
    %9 = vector.broadcast %cst_7 : f32 to vector<4x8xf32>
    %10 = arith.select %3, %8, %9 : vector<4x8xi1>, vector<4x8xf32>
    %cst_8 = arith.constant dense<0xFF800000> : vector<4xf32>
    %11 = vector.multi_reduction <maximumf>, %10, %cst_8 [1] : vector<4x8xf32> to vector<4xf32>
    %12 = vector.shape_cast %11 : vector<4xf32> to vector<4x1xf32>
    %13 = vector.broadcast %12 : vector<4x1xf32> to vector<4x8xf32>
    %14 = arith.subf %10, %13 : vector<4x8xf32>
    %15 = math.exp %14 : vector<4x8xf32>
    %cst_9 = arith.constant dense<0.000000e+00> : vector<4xf32>
    %16 = vector.multi_reduction <add>, %15, %cst_9 [1] : vector<4x8xf32> to vector<4xf32>
    %17 = vector.shape_cast %16 : vector<4xf32> to vector<4x1xf32>
    %18 = tpu.reciprocal %17 {approx = true} : vector<4x1xf32> -> vector<4x1xf32>
    %19 = arith.mulf %17, %18 : vector<4x1xf32>
    %cst_10 = arith.constant 2.000000e+00 : f32
    %20 = vector.broadcast %cst_10 : f32 to vector<4x1xf32>
    %21 = arith.subf %20, %19 : vector<4x1xf32>
    %22 = arith.mulf %18, %21 : vector<4x1xf32>
    %23 = vector.broadcast %22 : vector<4x1xf32> to vector<4x8xf32>
    %24 = arith.mulf %15, %23 : vector<4x8xf32>
    %c0_11 = arith.constant 0 : index
    %c0_12 = arith.constant 0 : index
    %25 = vector.load %arg7[%c0_11, %c0_12] : memref<4x8xf32, #tpu.memory_space<vmem>>, vector<4x8xf32>
    tpu.vector_store %arg7[%c0_11, %c0_12], %24 {strides = array<i32>} : memref<4x8xf32, #tpu.memory_space<vmem>>, vector<4x8xf32>,
    %cst_13 = arith.constant 0.000000e+00 : f32
    %26 = vector.broadcast %cst_13 : f32 to vector<4x8xf32>
    %27 = arith.select %3, %24, %26 : vector<4x8xi1>, vector<4x8xf32>
    %28 = vector.shape_cast %27 : vector<4x8xf32> to vector<4x8x1xf32>
    %29 = vector.broadcast %28 : vector<4x8x1xf32> to vector<4x8x32xf32>
    %30 = arith.mulf %29, %0 : vector<4x8x32xf32>
    %cst_14 = arith.constant dense<0.000000e+00> : vector<4x32xf32>
    %31 = vector.multi_reduction <add>, %30, %cst_14 [1] : vector<4x8x32xf32> to vector<4x32xf32>
    %cst_15 = arith.constant dense<0.000000e+00> : vector<4xf32>
    %32 = vector.multi_reduction <add>, %27, %cst_15 [1] : vector<4x8xf32> to vector<4xf32>
    %33 = vector.shape_cast %32 : vector<4xf32> to vector<4x1xf32>
    %c0_16 = arith.constant 0 : index
    %c0_17 = arith.constant 0 : index
    %34 = vector.load %arg4[%c0_16, %c0_17] : memref<32x32xf32, #tpu.memory_space<vmem>>, vector<32x32xf32>
    %cst_18 = arith.constant dense<0.000000e+00> : vector<4x32xf32>
    %35 = tpu.matmul %31, %34, %cst_18 {dimension_numbers = #tpu.dot_dimension_numbers<[1], [0], [0], [1], [0, 0, 1, 1], [], []>} : vector<4x32xf32>, vector<32x32xf32>, vector<4x32xf32> -> vector<4x32xf32>
    %c0_19 = arith.constant 0 : index
    %c0_20 = arith.constant 0 : index
    %36 = vector.load %arg5[%c0_19, %c0_20] : memref<1x32xf32, #tpu.memory_space<vmem>>, vector<1x32xf32>
    %37 = vector.broadcast %33 : vector<4x1xf32> to vector<4x32xf32>
    %38 = vector.broadcast %36 : vector<1x32xf32> to vector<4x32xf32>
    %39 = arith.mulf %37, %38 : vector<4x32xf32>
    %40 = arith.addf %35, %39 : vector<4x32xf32>
    %c0_21 = arith.constant 0 : index
    %c0_22 = arith.constant 0 : index
    %41 = vector.load %arg6[%c0_21, %c0_22] : memref<4x32xf32, #tpu.memory_space<vmem>>, vector<4x32xf32>
    tpu.vector_store %arg6[%c0_21, %c0_22], %40 {strides = array<i32>} : memref<4x32xf32, #tpu.memory_space<vmem>>, vector<4x32xf32>,
    return
  }
  func.func @transform_0(%arg0: i32) -> (i32, i32, i32) {
    %c0_i32 = arith.constant 0 : i32
    %c0_i32_0 = arith.constant 0 : i32
    %c0_i32_1 = arith.constant 0 : i32
    return %arg0, %c0_i32, %c0_i32_0 : i32, i32, i32
  }
  func.func @transform_1(%arg0: i32) -> (i32, i32) {
    %c0_i32 = arith.constant 0 : i32
    %c0_i32_0 = arith.constant 0 : i32
    return %arg0, %c0_i32 : i32, i32
  }
  func.func @transform_2(%arg0: i32) -> (i32, i32) {
    %c0_i32 = arith.constant 0 : i32
    %c0_i32_0 = arith.constant 0 : i32
    %c0_i32_1 = arith.constant 0 : i32
    return %c0_i32, %c0_i32_0 : i32, i32
  }
  func.func @transform_3(%arg0: i32) -> (i32, i32) {
    %c0_i32 = arith.constant 0 : i32
    %c0_i32_0 = arith.constant 0 : i32
    %c0_i32_1 = arith.constant 0 : i32
    return %c0_i32, %c0_i32_0 : i32, i32
  }
  func.func @transform_4(%arg0: i32) -> (i32, i32) {
    %c0_i32 = arith.constant 0 : i32
    %c0_i32_0 = arith.constant 0 : i32
    %c0_i32_1 = arith.constant 0 : i32
    return %c0_i32, %c0_i32_0 : i32, i32
  }
  func.func @transform_5(%arg0: i32) -> (i32, i32) {
    %c0_i32 = arith.constant 0 : i32
    %c0_i32_0 = arith.constant 0 : i32
    return %arg0, %c0_i32 : i32, i32
  }
  func.func @transform_6(%arg0: i32) -> (i32, i32) {
    %c0_i32 = arith.constant 0 : i32
    %c0_i32_0 = arith.constant 0 : i32
    return %arg0, %c0_i32 : i32, i32
  }
}

</mosaic_0001>

<bundles_post_ra>
// kernel: tpu_custom_call.1
= control target key start
LH: loop header
LB: loop body
LE: loop exit
PB: predicated region body
PF: predicated region fallthrough
CT: control target
= control target key end

     0   :  { %12 = vsyncpa [#allocation3], 0  ;;  %s638_s0 = inlined_call_operand.hbm [shape: f32[4,8,32], index: 0, kind: input, shape index: {}]   ;;  %s639_s1 = inlined_call_operand.hbm [shape: f32[4,8], index: 1, kind: input, shape index: {}]   ;;  %s640_s2 = inlined_call_operand.vmem [shape: f32[1,32], index: 2, kind: input, shape index: {}]   ;;  %s641_s3 = inlined_call_operand.hbm [shape: f32[32,32], index: 3, kind: input, shape index: {}]   ;;  %s642_s4 = inlined_call_operand.vmem [shape: f32[1,32], index: 4, kind: input, shape index: {}]   ;;  %s643_s5 = inlined_call_operand.hbm [shape: f32[4,32], index: 5, kind: output, shape index: {0}]   ;;  %s644_s6 = inlined_call_operand.hbm [shape: f32[4,8], index: 6, kind: output, shape index: {1}]  }
   0x1   :  { %13 = vsyncpa [#allocation6], 0 }
   0x2   :  { %14 = vsyncpa [#allocation4], 0 }
   0x3   :  { %15 = vsyncpa [#allocation10], 0  ;;  %s483_s21 = smov [#allocation5]   ;;  %s484_s23 = smov [#allocation2]  }
   0x4   :  { %s34_s22 = sshll.u32 %s483_s21, 4  ;;  %s21_s24 = sshll.u32 %s484_s23, 4  ;;  %s35_s22 = int_to_ptr.vmem [resolvable:$true] %s34_s22  ;;  %s528_s24 = int_to_ptr.vmem [resolvable:$true] %s21_s24 }
   0x5   :  { %s365_s27 = scalar_lea.hbm %s639_s1, 64 }
   0x6   :  { %p366_p0 = scmp.ne.s32.totalorder %s639_s1, %s365_s27  ;;  %p369_p1 = scmp.lt.u32.totalorder %s365_s27, %s639_s1 }
   0x8   :  { %p371_p2 = pnand %p369_p1, %p366_p0 }
   0xa   :  { %374 = shalt.err (!%p371_p2)
}
   0xb   :  { %s375_s8 = scalar_lea.vmem %s35_s22, 64  ;;  %p380_p4 = scmp.lt.s32.totalorder %s35_s22, %s35_s22 }
   0xc   :  { %p376_p3 = scmp.ne.s32.totalorder %s35_s22, %s375_s8  ;;  %p381_p5 = scmp.lt.s32.totalorder %s375_s8, %s375_s8 }
   0xe   :  { %p382_p6 = por %p381_p5, %p380_p4 }
  0x10   :  { %p383_p7 = pnand %p382_p6, %p376_p3 }
  0x12   :  { %386 = shalt.err (!%p383_p7)
}
  0x13   :  { %37 = dma.hbm_to_vmem [thread:$0]  %s639_s1, 64, %s35_s22, [#allocation6]  }
  0x14   :  { %s387_s13 = scalar_lea.hbm %s638_s0, 512 }
  0x15   :  { %p388_p8 = scmp.ne.s32.totalorder %s638_s0, %s387_s13  ;;  %p391_p9 = scmp.lt.u32.totalorder %s387_s13, %s638_s0 }
  0x17   :  { %p393_p10 = pnand %p391_p9, %p388_p8 }
  0x19   :  { %396 = shalt.err (!%p393_p10)
}
  0x1a   :  { %s397_s18 = scalar_lea.vmem %s528_s24, 512  ;;  %p402_p12 = scmp.lt.s32.totalorder %s528_s24, %s528_s24 }
  0x1b   :  { %p398_p11 = scmp.ne.s32.totalorder %s528_s24, %s397_s18  ;;  %p403_p13 = scmp.lt.s32.totalorder %s397_s18, %s397_s18 }
  0x1d   :  { %p404_p0 = por %p403_p13, %p402_p12 }
  0x1f   :  { %p405_p1 = pnand %p404_p0, %p398_p11 }
  0x21   :  { %408 = shalt.err (!%p405_p1)
}
  0x22   :  { %s485_s1 = smov 128   ;;  %s486_s19 = smov 8  }
  0x23   :  { %27 = dma.hbm_to_vmem [thread:$0]  %s638_s0, 512, %s528_s24, [#allocation3], %s485_s1, %s485_s1, %s486_s19  }
  0x24   :  { %s487_s22 = smov [#allocation7]   ;;  %s409_s27 = scalar_lea.hbm %s641_s3, 512 }
  0x25   :  { %s45_s23 = sshll.u32 %s487_s22, 4  ;;  %p410_p2 = scmp.ne.s32.totalorder %s641_s3, %s409_s27  ;;  %s46_s23 = int_to_ptr.vmem [resolvable:$true] %s45_s23 }
  0x26   :  { %p413_p3 = scmp.lt.u32.totalorder %s409_s27, %s641_s3 }
  0x28   :  { %p415_p4 = pnand %p413_p3, %p410_p2 }
  0x2a   :  { %418 = shalt.err (!%p415_p4)
}
  0x2b   :  { %s419_s8 = scalar_lea.vmem %s46_s23, 512  ;;  %p424_p6 = scmp.lt.s32.totalorder %s46_s23, %s46_s23 }
  0x2c   :  { %p420_p5 = scmp.ne.s32.totalorder %s46_s23, %s419_s8  ;;  %p425_p7 = scmp.lt.s32.totalorder %s419_s8, %s419_s8 }
  0x2e   :  { %p426_p8 = por %p425_p7, %p424_p6 }
  0x30   :  { %p427_p9 = pnand %p426_p8, %p420_p5 }
  0x32   :  { %430 = shalt.err (!%p427_p9)
}
  0x33   :  { %51 = dma.hbm_to_vmem [thread:$0]  %s641_s3, 512, %s46_s23, [#allocation6], %s485_s1, %s485_s1, %s486_s19  }
  0x34   :  { %475 = dma.done.wait [#allocation3], 512  }
  0x35   :  { %476 = vsyncadd [#allocation3], 4294966784 }
  0x36   :  { %477 = dma.done.wait [#allocation6], 576  }
  0x37   :  { %478 = vsyncadd [#allocation6], 4294966720  ;;  %v571_v0 = vld [vmem:[#allocation2] sm:$0xff]  ;;  %vm80_vm0 = vcmask 261120   ;;  %v576_v2 = vld [vmem:[#allocation2 + $0x10] sm:$0xff]  ;;  %v97_v13 = vlaneseq  ;;  %vm115_vm1 = vcmask 1041409  }
  0x38   :  { %v326_v1 = vld [vmem:[%s640_s2] ss:$0 sm:$0xff]  ;;  %v580_v5 = vld [vmem:[#allocation2 + $0x8] sm:$0xff]  ;;  %v582_v6 = vld [vmem:[#allocation2 + $0x18] sm:$0xff]  ;;  %vm117_vm2 = vcmask 1042434   ;;  %vm119_vm3 = vcmask 1043459  }
  0x39   :  { %v76_v3 = vmul.f32 %v326_v1, %v571_v0  ;;  %v78_v4 = vmul.f32 %v326_v1, %v576_v2  ;;  %v77_v7 = vmul.f32 %v326_v1, %v580_v5  ;;  %v79_v8 = vmul.f32 %v326_v1, %v582_v6  ;;  %v67_v21 = vld [vmem:[#allocation5] sm:$0xf]  ;;  %v203_v50 = vld [vmem:[#allocation7] sm:$0xff]  ;;  %v204_v51 = vld [vmem:[#allocation7 + $0x8] sm:$0xff]  ;;  %s491_s2 = smov [#allocation9]  }
  0x3a   :  { %v98_v14 = vand.u32 127, %v97_v13  ;;  %v100_v15 = vshrl.u32 %v97_v13, 7  ;;  %vm68_vm4 = vcmp.gt.f32.partialorder %v67_v21, 0.0  ;;  %vm123_vm5 = vcmask 60416   ;;  %v205_v55 = vld [vmem:[#allocation7 + $0x10] sm:$0xff]  ;;  %v206_v56 = vld [vmem:[#allocation7 + $0x18] sm:$0xff] }
  0x3b   :  { %v81_v9 = vsel %vm80_vm0, %v76_v3, 0.0  ;;  %v87_v10 = vsel %vm80_vm0, %v78_v4, 0.0  ;;  %v84_v11 = vsel %vm80_vm0, %v77_v7, 0.0  ;;  %v90_v12 = vsel %vm80_vm0, %v79_v8, 0.0  ;;  %s312_s3 = sshll.u32 %s491_s2, 4  ;;  %s313_s3 = int_to_ptr.vmem [resolvable:$true] %s312_s3 }
  0x3c   :  { %82 = vadd.xlane.f32.xlu0 %v81_v9  ;;  %88 = vadd.xlane.f32.xlu1 %v87_v10  ;;  %v101_v18 = vsub.s32 %v98_v14, %v100_v15  ;;  %v149_v41 = vsub.s32 1, %v100_v15  ;;  %v142_v42 = vsub.s32 0, %v100_v15  ;;  %v156_v47 = vsub.s32 2, %v100_v15  ;;  %s431_s11 = scalar_lea.vmem %s313_s3, 64  ;;  %p436_p11 = scmp.lt.s32.totalorder %s313_s3, %s313_s3 }
  0x3d   :  { %v163_v49 = vsub.s32 3, %v100_v15  ;;  %v346_v52 = vpack.c.bf16 %v204_v51, %v203_v50  ;;  %v488_v53 = vmov 0.0|0.0   ;;  %v349_v57 = vpack.c.bf16 %v206_v56, %v205_v55  ;;  %p432_p10 = scmp.ne.s32.totalorder %s313_s3, %s431_s11  ;;  %p437_p12 = scmp.lt.s32.totalorder %s431_s11, %s431_s11 }
  0x3e   :  { %345 = vmatprep.subr.bf16.mxu0 %v488_v53  ;;  %vm489_vm6 = vmmov 0   ;;  %v490_v58 = vmov 0.0  }
  0x3f   :  { %347 = vmatpush3.bf16.msra.mxu0 %v346_v52  ;;  %342 = vmatprep.mubr.msk.f32.mxu0 %vm489_vm6, %v490_v58  ;;  %p438_p13 = por %p437_p12, %p436_p11 }
  0x40   :  { %85 = vadd.xlane.f32.xlu0 %v84_v11  ;;  %91 = vadd.xlane.f32.xlu1 %v90_v12 }
  0x41   :  { %348 = vmatprep.subr.bf16.mxu0 %v488_v53  ;;  %p439_p0 = pnand %p438_p13, %p432_p10 }
  0x43   :  { %350 = vmatpush3.bf16.msra.mxu0 %v349_v57 }
  0xc9   :  { %v83_v16 = vpop.xlane.xlu0 %82  ;;  %v89_v17 = vpop.xlane.xlu1 %88 }
  0xca   :  { %v102_v22 = vrot.slane %v83_v16, %v101_v18  ;;  %v110_v25 = vrot.slane %v89_v17, %v101_v18 }
  0xcd   :  { %v86_v19 = vpop.xlane.xlu0 %85  ;;  %v92_v20 = vpop.xlane.xlu1 %91 }
  0xce   :  { %v106_v23 = vrot.slane %v86_v19, %v101_v18  ;;  %v114_v24 = vrot.slane %v92_v20, %v101_v18 }
  0xd0   :  { %v116_v26 = vsel %vm115_vm1, %v106_v23, %v102_v22 }
  0xd1   :  { %v118_v27 = vsel %vm117_vm2, %v110_v25, %v116_v26 }
  0xd2   :  { %v120_v28 = vsel %vm119_vm3, %v114_v24, %v118_v27 }
  0xd3   :  { %v122_v29 = vsel %vm68_vm4, %v120_v28, -1e+32 }
  0xd4   :  { %v124_v30 = vsel %vm123_vm5, %v122_v29, -inf }
  0xd5   :  { %125 = vmax.xlane.f32.xlu0 %v124_v30 }
 0x162   :  { %v126_v31 = vpop.xlane.xlu0 %125 }
 0x163   :  { %v127_v32 = vsub.f32 %v122_v29, %v126_v31 }
 0x165   :  { %v128_v33 = vmul.f32 1.442695, %v127_v32 }
 0x167   :  { %361 = vpow2.f32 %v128_v33 }
 0x171   :  { %v362_v34 = vpop.eup %361 }
 0x172   :  { %v130_v35 = vsel %vm123_vm5, %v362_v34, 0.0 }
 0x173   :  { %131 = vadd.xlane.f32.xlu1 %v130_v35 }
 0x200   :  { %v132_v36 = vpop.xlane.xlu1 %131 }
 0x201   :  { %363 = vrcp.f32 %v132_v36 }
 0x20b   :  { %v364_v37 = vpop.eup %363 }
 0x20c   :  { %v134_v38 = vmul.f32 %v364_v37, %v132_v36 }
 0x20e   :  { %v135_v39 = vsub.f32 2.0, %v134_v38 }
 0x210   :  { %v136_v40 = vmul.f32 %v364_v37, %v135_v39 }
 0x212   :  { %v137_v43 = vmul.f32 %v362_v34, %v136_v40 }
 0x214   :  { %138 = vst.msk [vmem:[#allocation9] sm:$0xf] %vm123_vm5, %v137_v43  ;;  %v139_v44 = vsel %vm68_vm4, %v137_v43, 0.0 }
 0x215   :  { %v150_v45 = vrot.slane %v139_v44, %v149_v41  ;;  %v143_v46 = vrot.slane %v139_v44, %v142_v42  ;;  %v157_v48 = vrot.slane %v139_v44, %v156_v47  ;;  %v164_v54 = vrot.slane %v139_v44, %v163_v49 }
 0x216   :  { %v200_v59 = vsel %vm123_vm5, %v139_v44, 0.0 }
 0x217   :  { %152 = vbcast.lane.b32.xlu1 %v150_v45, 256  ;;  %145 = vbcast.lane.b32.xlu0 %v143_v46, 256 }
 0x21b   :  { %159 = vbcast.lane.b32.xlu1 %v157_v48, 256 }
 0x21f   :  { %166 = vbcast.lane.b32.xlu1 %v164_v54, 256 }
 0x236   :  { %201 = vadd.xlane.f32.xlu0 %v200_v59 }
 0x289   :  { %v153_v60 = vpop.permute.xlu1 %152  ;;  %v146_v61 = vpop.permute.xlu0 %145 }
 0x28a   :  { %v169_v62 = vmul.f32 %v153_v60, %v580_v5  ;;  %v168_v63 = vmul.f32 %v146_v61, %v571_v0 }
 0x28c   :  { %v179_v1 = vsel %vm80_vm0, %v169_v62, 0.0  ;;  %v172_v3 = vsel %vm80_vm0, %v168_v63, 0.0 }
 0x28d   :  { %v180_v4 = vrot.slane %v179_v1, 4  ;;  %v173_v7 = vrot.slane %v172_v3, 4  ;;  %v160_v8 = vpop.permute.xlu1 %159 }
 0x28e   :  { %v170_v9 = vmul.f32 %v160_v8, %v576_v2 }
 0x28f   :  { %v181_v10 = vadd.f32 %v180_v4, %v179_v1  ;;  %v174_v11 = vadd.f32 %v173_v7, %v172_v3 }
 0x290   :  { %v186_v12 = vsel %vm80_vm0, %v170_v9, 0.0 }
 0x291   :  { %v182_v13 = vrot.slane %v181_v10, 2  ;;  %v175_v14 = vrot.slane %v174_v11, 2  ;;  %v187_v15 = vrot.slane %v186_v12, 4  ;;  %v167_v16 = vpop.permute.xlu1 %166 }
 0x292   :  { %v171_v5 = vmul.f32 %v167_v16, %v582_v6 }
 0x293   :  { %v183_v0 = vadd.f32 %v182_v13, %v181_v10  ;;  %v176_v17 = vadd.f32 %v175_v14, %v174_v11  ;;  %v188_v18 = vadd.f32 %v187_v15, %v186_v12 }
 0x294   :  { %v193_v19 = vsel %vm80_vm0, %v171_v5, 0.0 }
 0x295   :  { %v189_v20 = vrot.slane %v188_v18, 2  ;;  %v194_v21 = vrot.slane %v193_v19, 4  ;;  %v184_v22 = vrot.slane %v183_v0, 1  ;;  %v177_v23 = vrot.slane %v176_v17, 1 }
 0x297   :  { %v190_v2 = vadd.f32 %v189_v20, %v188_v18  ;;  %v195_v24 = vadd.f32 %v194_v21, %v193_v19  ;;  %v185_v27 = vadd.f32 %v184_v22, %v183_v0  ;;  %v178_v28 = vadd.f32 %v177_v23, %v176_v17 }
 0x299   :  { %v191_v25 = vrot.slane %v190_v2, 1  ;;  %v196_v26 = vrot.slane %v195_v24, 2  ;;  %v219_v6 = vsel %vm115_vm1, %v185_v27, %v178_v28 }
 0x29b   :  { %v197_v29 = vadd.f32 %v196_v26, %v195_v24  ;;  %v192_v30 = vadd.f32 %v191_v25, %v190_v2 }
 0x29d   :  { %v198_v31 = vrot.slane %v197_v29, 1  ;;  %v220_v33 = vsel %vm117_vm2, %v192_v30, %v219_v6 }
 0x29f   :  { %v199_v32 = vadd.f32 %v198_v31, %v197_v29 }
 0x2a1   :  { %v221_v34 = vsel %vm119_vm3, %v199_v32, %v220_v33 }
 0x2a2   :  { %343 = vmatmul.mubr.msk.f32.vlgmr.msra.gmra.mrb[0].mxu0 %vm80_vm0, %v221_v34 }
 0x2a3   :  { %442 = shalt.err (!%p439_p0)
}
 0x2a4   :  { %s443_s14 = scalar_lea.hbm %s644_s6, 64 }
 0x2a5   :  { %p444_p1 = scmp.ne.s32.totalorder %s644_s6, %s443_s14  ;;  %p447_p2 = scmp.lt.u32.totalorder %s443_s14, %s644_s6 }
 0x2a7   :  { %p449_p3 = pnand %p447_p2, %p444_p1 }
 0x2a9   :  { %452 = shalt.err (!%p449_p3)
}
 0x2aa   :  { %315 = dma.vmem_to_hbm [thread:$0]  %s313_s3, 64, %s644_s6, [#allocation10]   ;;  %v327_v35 = vld [vmem:[%s642_s4] ss:$0 sm:$0xff]  ;;  %vm294_vm7 = vcmask 257024  }
 0x2ab   :  { %s492_s22 = smov [#allocation8]  }
 0x2ac   :  { %s302_s23 = sshll.u32 %s492_s22, 4  ;;  %s303_s23 = int_to_ptr.vmem [resolvable:$true] %s302_s23 }
 0x2ad   :  { %s453_s25 = scalar_lea.vmem %s303_s23, 64  ;;  %p458_p5 = scmp.lt.s32.totalorder %s303_s23, %s303_s23 }
 0x2ae   :  { %p454_p4 = scmp.ne.s32.totalorder %s303_s23, %s453_s25  ;;  %p459_p6 = scmp.lt.s32.totalorder %s453_s25, %s453_s25 }
 0x2b0   :  { %p460_p7 = por %p459_p6, %p458_p5 }
 0x2b2   :  { %p461_p8 = pnand %p460_p7, %p454_p4 }
 0x2c3   :  { %v202_v36 = vpop.xlane.xlu0 %201 }
 0x2c4   :  { %v214_v37 = vmul.f32 %v327_v35, %v202_v36 }
 0x375   :  { %v290_v38 = vpop.f32.mrb[0].mxu0 }
 0x376   :  { %v291_v39 = vadd.f32 %v290_v38, %v214_v37  ;;  %v344_v40 = vpop.f32.mrb[1].mxu0 }
 0x378   :  { %295 = vst.msk [vmem:[#allocation8] sm:$0xf] %vm294_vm7, %v291_v39 }
 0x379   :  { %464 = shalt.err (!%p461_p8)
}
 0x37a   :  { %s465_s4 = scalar_lea.hbm %s643_s5, 64 }
 0x37b   :  { %p466_p9 = scmp.ne.s32.totalorder %s643_s5, %s465_s4  ;;  %p469_p10 = scmp.lt.u32.totalorder %s465_s4, %s643_s5 }
 0x37d   :  { %p471_p11 = pnand %p469_p10, %p466_p9 }
 0x37f   :  { %474 = shalt.err (!%p471_p11)
}
 0x380   :  { %305 = dma.vmem_to_hbm [thread:$0]  %s303_s23, 64, %s643_s5, [#allocation4]  }
 0x381   :  { %479 = dma.done.wait [#allocation4], 64  }
 0x382   :  { %480 = vsyncadd [#allocation4], 4294967232 }
 0x383   :  { %481 = dma.done.wait [#allocation10], 64  }
 0x384   :  { %482 = vsyncadd [#allocation10], 4294967232 }
 0x385   :  { %322 = vsyncpa [#allocation3], 1 }
 0x386   :  { %323 = vsyncpa [#allocation6], 1 }
 0x387   :  { %324 = vsyncpa [#allocation4], 1 }
 0x388   :  { %325 = vsyncpa [#allocation10], 1 }

</bundles_post_ra>
